<compile_context>
chip_gen: v7x
topology: tpu7x:2x2x1
jax: 0.10.0
libtpu: 0.0.40
codegen_flags: <defaults>
</compile_context>

<pallas_src>
import functools

import jax
import jax.numpy as jnp
from jax import lax
from jax.experimental import pallas as pl
from jax.experimental.pallas import tpu as pltpu

K = 3          # kernel size
EPS = 1e-5     # BatchNorm2d default eps


# ----------------------------------------------------------------------------
# Kernel A: fused 3x3 conv + bias + ReLU, plus per-channel sum / sumsq
#           accumulated across the batch (for BatchNorm statistics).
# Layout inside: (C, H*W) -> spatial on lanes (lane-dense), channels on sublanes.
# Grid: (N,), sequential ("arbitrary") so stats accumulate across images.
# ----------------------------------------------------------------------------
def conv_relu_stats_kernel(x_ref, w_ref, b_ref,          # inputs
                           y_ref, s_ref, ss_ref,         # outputs
                           xbig_ref, s_acc, ss_acc,      # scratch
                           *, H, W, C, compute_dtype):
    n = pl.program_id(0)
    HW = H * W

    @pl.when(n == 0)
    def _init():
        # Zero the whole padded-flat-image scratch once; only its interior is
        # overwritten each step, so the halo regions stay zero.
        xbig_ref[...] = jnp.zeros_like(xbig_ref)
        s_acc[...] = jnp.zeros_like(s_acc)
        ss_acc[...] = jnp.zeros_like(ss_acc)

    # Place the flattened image at lane offset W+1 of the scratch:
    #   xbig[c, q] = x[c, q - (W+1)]  for q in [W+1, W+1+HW), zeros elsewhere.
    xbig_ref[:, W + 1:W + 1 + HW] = x_ref[0]

    # Column index of each flattened spatial position (for width-edge masking).
    pos = lax.broadcasted_iota(jnp.int32, (1, HW), 1)
    col = pos % W

    # im2col: tap (dy, dx) for output position p needs input flat index
    # p + dy*W + dx, i.e. xbig lane p + (dy+1)*W + (dx+1) -- a static,
    # contiguous lane slice. Row over/underflow lands in the zero halo; the
    # only masking needed is for the width edges (dx != 0).
    taps = []
    for t in range(K * K):
        dy = t // K - 1
        dx = t % K - 1
        off = (dy + 1) * W + (dx + 1)
        slab = xbig_ref[:, off:off + HW]                 # (C, HW) f32
        if dx == -1:
            slab = jnp.where(col >= 1, slab, 0.0)
        elif dx == 1:
            slab = jnp.where(col <= W - 2, slab, 0.0)
        taps.append(slab)
    patch = jnp.concatenate(taps, axis=0).astype(compute_dtype)   # (9C, HW)

    # Single fused matmul: (C, 9C) @ (9C, HW) -> (C, HW), f32 accumulation.
    acc = jnp.dot(w_ref[...], patch, preferred_element_type=jnp.float32)
    acc = jnp.maximum(acc + b_ref[...], 0.0)             # bias + ReLU (f32)

    # Lane-dense output store (last dim HW >= 128).
    y_ref[...] = acc[None].astype(y_ref.dtype)

    # Per-channel stats, accumulated in f32 VMEM scratch.
    s_acc[...] += jnp.sum(acc, axis=1, keepdims=True)
    ss_acc[...] += jnp.sum(acc * acc, axis=1, keepdims=True)

    @pl.when(n == pl.num_programs(0) - 1)
    def _finalize():
        s_ref[...] = s_acc[...]
        ss_ref[...] = ss_acc[...]


# ----------------------------------------------------------------------------
# Kernel B: apply folded BatchNorm affine: out = y * scale + shift (per channel)
# ----------------------------------------------------------------------------
def bn_apply_kernel(y_ref, scale_ref, shift_ref, o_ref):
    y = y_ref[...].astype(jnp.float32)                   # (1, C, HW)
    o_ref[...] = y * scale_ref[...] + shift_ref[...]


def conv_bridge_block(x_nchw, w_oihw, bias, gamma, beta,
                      compute_dtype=jnp.bfloat16, y_dtype=jnp.bfloat16):
    """Forward pass of ConvBridgeBlock. x_nchw: (N, C, H, W) float32."""
    N, C, H, W = x_nchw.shape
    HW = H * W

    # Free reshapes only (no transpose / pad HBM passes).
    x_flat = x_nchw.reshape(N, C, HW)
    # (Cout, Cin, kh, kw) -> (Cout, kh*kw*Cin): column index = tap*C + cin.
    w_mat = jnp.transpose(w_oihw, (0, 2, 3, 1)).reshape(C, K * K * C)
    w_mat = w_mat.astype(compute_dtype)
    b_col = bias.reshape(C, 1).astype(jnp.float32)

    cd_bytes = jnp.dtype(compute_dtype).itemsize
    y_bytes = jnp.dtype(y_dtype).itemsize

    kern_a = functools.partial(conv_relu_stats_kernel, H=H, W=W, C=C,
                               compute_dtype=compute_dtype)
    y_flat, s, ss = pl.pallas_call(
        kern_a,
        grid=(N,),
        in_specs=[
            pl.BlockSpec((1, C, HW), lambda n: (n, 0, 0)),
            pl.BlockSpec((C, K * K * C), lambda n: (0, 0)),
            pl.BlockSpec((C, 1), lambda n: (0, 0)),
        ],
        out_specs=[
            pl.BlockSpec((1, C, HW), lambda n: (n, 0, 0)),
            pl.BlockSpec((C, 1), lambda n: (0, 0)),
            pl.BlockSpec((C, 1), lambda n: (0, 0)),
        ],
        out_shape=[
            jax.ShapeDtypeStruct((N, C, HW), y_dtype),
            jax.ShapeDtypeStruct((C, 1), jnp.float32),
            jax.ShapeDtypeStruct((C, 1), jnp.float32),
        ],
        scratch_shapes=[
            pltpu.VMEM((C, HW + 2 * W + 2), jnp.float32),  # zero-padded flat image
            pltpu.VMEM((C, 1), jnp.float32),               # sum accumulator
            pltpu.VMEM((C, 1), jnp.float32),               # sumsq accumulator
        ],
        compiler_params=pltpu.CompilerParams(
            dimension_semantics=("arbitrary",)),           # stats accumulate over N
        cost_estimate=pl.CostEstimate(
            flops=2 * N * C * (K * K * C) * HW,
            transcendentals=0,
            bytes_accessed=(N * C * HW * 4 + C * K * K * C * cd_bytes + C * 4
                            + N * C * HW * y_bytes + 2 * C * 4)),
    )(x_flat, w_mat, b_col)

    # Tiny per-channel scalar work: fold BN (training-mode batch stats) into affine.
    count = jnp.float32(N * H * W)
    mean = s / count                                       # (C, 1)
    var = jnp.maximum(ss / count - mean * mean, 0.0)       # biased var, clamped
    scale = gamma.reshape(C, 1) / jnp.sqrt(var + EPS)
    shift = beta.reshape(C, 1) - mean * scale

    out_flat = pl.pallas_call(
        bn_apply_kernel,
        grid=(N,),
        in_specs=[
            pl.BlockSpec((1, C, HW), lambda n: (n, 0, 0)),
            pl.BlockSpec((C, 1), lambda n: (0, 0)),
            pl.BlockSpec((C, 1), lambda n: (0, 0)),
        ],
        out_specs=pl.BlockSpec((1, C, HW), lambda n: (n, 0, 0)),
        out_shape=jax.ShapeDtypeStruct((N, C, HW), jnp.float32),
        compiler_params=pltpu.CompilerParams(
            dimension_semantics=("parallel",)),
        cost_estimate=pl.CostEstimate(
            flops=2 * N * C * HW,
            transcendentals=0,
            bytes_accessed=N * C * HW * (y_bytes + 4) + 2 * C * 4),
    )(y_flat, scale, shift)

    return out_flat.reshape(N, C, H, W)                    # free reshape (NCHW)


# ----------------------------------------------------------------------------
# Pure-JAX reference (for correctness check).
# ----------------------------------------------------------------------------
def reference(x_nchw, w_oihw, bias, gamma, beta):
    N, C, H, W = x_nchw.shape
    y = lax.conv_general_dilated(
        x_nchw, w_oihw, window_strides=(1, 1), padding="SAME",
        dimension_numbers=("NCHW", "OIHW", "NCHW"))
    y = y + bias.reshape(1, C, 1, 1)
    y = jnp.maximum(y, 0.0)
    mean = jnp.mean(y, axis=(0, 2, 3), keepdims=True)
    var = jnp.mean((y - mean) ** 2, axis=(0, 2, 3), keepdims=True)  # biased
    yhat = (y - mean) / jnp.sqrt(var + EPS)
    return yhat * gamma.reshape(1, C, 1, 1) + beta.reshape(1, C, 1, 1)


if __name__ == "__main__":
    N, C, H, W = 2, 4, 16, 16

    key = jax.random.PRNGKey(0)
    kx, kw, kb, kg, kbeta = jax.random.split(key, 5)

    x = jax.random.normal(kx, (N, C, H, W), jnp.float32)
    # deterministic synthetic parameters (shapes per nn.Conv2d / nn.BatchNorm2d)
    w = jax.random.normal(kw, (C, C, K, K), jnp.float32) * 0.1   # (Cout,Cin,kh,kw)
    b = jax.random.normal(kb, (C,), jnp.float32) * 0.1
    gamma = 1.0 + 0.1 * jax.random.normal(kg, (C,), jnp.float32)
    beta = 0.1 * jax.random.normal(kbeta, (C,), jnp.float32)

    ref = reference(x, w, b, gamma, beta)

    # Strict check: f32 compute / f32 intermediate.
    out_f32 = conv_bridge_block(x, w, b, gamma, beta,
                                compute_dtype=jnp.float32, y_dtype=jnp.float32)
    out_f32 = jax.block_until_ready(out_f32)
    assert out_f32.shape == (N, C, H, W)
    err_f32 = float(jnp.max(jnp.abs(out_f32 - ref)))
    assert err_f32 < 1e-3, err_f32

    # Default perf config: bf16 MXU operands + bf16 intermediate (looser check).
    out_bf16 = jax.block_until_ready(conv_bridge_block(x, w, b, gamma, beta))
    assert out_bf16.shape == (N, C, H, W)
    err_bf16 = float(jnp.max(jnp.abs(out_bf16 - ref)))
    assert err_bf16 < 5e-2, err_bf16

    print("KERNEL_OK")
</pallas_src>

<mosaic_0001>
module attributes {stable_mosaic.version = 11 : i64} {
  func.func @conv_relu_stats_kernel(%arg0: i32, %arg1: memref<1x4x256xf32, #tpu.memory_space<vmem>>, %arg2: memref<4x36xf32, #tpu.memory_space<vmem>>, %arg3: memref<4x1xf32, #tpu.memory_space<vmem>>, %arg4: memref<1x4x256xf32, #tpu.memory_space<vmem>>, %arg5: memref<4x1xf32, #tpu.memory_space<vmem>>, %arg6: memref<4x1xf32, #tpu.memory_space<vmem>>, %arg7: memref<4x290xf32, #tpu.memory_space<vmem>>, %arg8: memref<4x1xf32, #tpu.memory_space<vmem>>, %arg9: memref<4x1xf32, #tpu.memory_space<vmem>>) attributes {dimension_semantics = [#tpu.dimension_semantics<arbitrary>], iteration_bounds = array<i64: 2>, scalar_prefetch = 0 : i64, scratch_operands = 3 : i64, tpu.core_type = #tpu.core_type<tc>, window_params = [{transform_indices = @transform_0, window_bounds = array<i64: 1, 4, 256>}, {pipeline_mode = #tpu.pipeline_mode<synchronous>, transform_indices = @transform_1, window_bounds = array<i64: 4, 36>}, {pipeline_mode = #tpu.pipeline_mode<synchronous>, transform_indices = @transform_2, window_bounds = array<i64: 4, 1>}, {transform_indices = @transform_3, window_bounds = array<i64: 1, 4, 256>}, {pipeline_mode = #tpu.pipeline_mode<synchronous>, transform_indices = @transform_4, window_bounds = array<i64: 4, 1>}, {pipeline_mode = #tpu.pipeline_mode<synchronous>, transform_indices = @transform_5, window_bounds = array<i64: 4, 1>}]} {
    %c0_i32 = arith.constant 0 : i32
    %0 = arith.cmpi eq, %arg0, %c0_i32 : i32
    %1 = arith.extui %0 : i1 to i32
    %c0_i32_0 = arith.constant 0 : i32
    %2 = arith.cmpi ne, %1, %c0_i32_0 : i32
    scf.if %2 {
      %cst_50 = arith.constant 0.000000e+00 : f32
      %92 = vector.broadcast %cst_50 : f32 to vector<4x290xf32>
      %c0_51 = arith.constant 0 : index
      %c0_52 = arith.constant 0 : index
      %93 = vector.load %arg7[%c0_51, %c0_52] : memref<4x290xf32, #tpu.memory_space<vmem>>, vector<4x290xf32>
      tpu.vector_store %arg7[%c0_51, %c0_52], %92 {strides = array<i32>} : memref<4x290xf32, #tpu.memory_space<vmem>>, vector<4x290xf32>,
      %cst_53 = arith.constant 0.000000e+00 : f32
      %94 = vector.broadcast %cst_53 : f32 to vector<4x1xf32>
      %c0_54 = arith.constant 0 : index
      %c0_55 = arith.constant 0 : index
      %95 = vector.load %arg8[%c0_54, %c0_55] : memref<4x1xf32, #tpu.memory_space<vmem>>, vector<4x1xf32>
      tpu.vector_store %arg8[%c0_54, %c0_55], %94 {strides = array<i32>} : memref<4x1xf32, #tpu.memory_space<vmem>>, vector<4x1xf32>,
      %cst_56 = arith.constant 0.000000e+00 : f32
      %96 = vector.broadcast %cst_56 : f32 to vector<4x1xf32>
      %c0_57 = arith.constant 0 : index
      %c0_58 = arith.constant 0 : index
      %97 = vector.load %arg9[%c0_57, %c0_58] : memref<4x1xf32, #tpu.memory_space<vmem>>, vector<4x1xf32>
      tpu.vector_store %arg9[%c0_57, %c0_58], %96 {strides = array<i32>} : memref<4x1xf32, #tpu.memory_space<vmem>>, vector<4x1xf32>,
    } else {
    }
    %c0 = arith.constant 0 : index
    %c0_1 = arith.constant 0 : index
    %c0_2 = arith.constant 0 : index
    %3 = vector.load %arg1[%c0, %c0_1, %c0_2] : memref<1x4x256xf32, #tpu.memory_space<vmem>>, vector<1x4x256xf32>
    %4 = vector.shape_cast %3 : vector<1x4x256xf32> to vector<4x256xf32>
    %c0_3 = arith.constant 0 : index
    %c17 = arith.constant 17 : index
    %5 = vector.load %arg7[%c0_3, %c17] : memref<4x290xf32, #tpu.memory_space<vmem>>, vector<4x256xf32>
    tpu.vector_store %arg7[%c0_3, %c17], %4 {strides = array<i32>} : memref<4x290xf32, #tpu.memory_space<vmem>>, vector<4x256xf32>,
    %6 = tpu.iota {dimensions = array<i32: 1>} : vector<1x256xi32>
    %c16_i32 = arith.constant 16 : i32
    %c0_i32_4 = arith.constant 0 : i32
    %7 = arith.cmpi eq, %c16_i32, %c0_i32_4 : i32
    %c1_i32 = arith.constant 1 : i32
    %8 = arith.select %7, %c1_i32, %c16_i32 : i32
    %9 = vector.broadcast %8 : i32 to vector<1x256xi32>
    %10 = arith.remsi %6, %9 : vector<1x256xi32>
    %c0_i32_5 = arith.constant 0 : i32
    %11 = vector.broadcast %c0_i32_5 : i32 to vector<1x256xi32>
    %12 = arith.cmpi ne, %10, %11 : vector<1x256xi32>
    %c0_i32_6 = arith.constant 0 : i32
    %13 = vector.broadcast %c0_i32_6 : i32 to vector<1x256xi32>
    %14 = arith.cmpi slt, %10, %13 : vector<1x256xi32>
    %c0_i32_7 = arith.constant 0 : i32
    %15 = arith.cmpi slt, %8, %c0_i32_7 : i32
    %16 = vector.broadcast %15 : i1 to vector<1x256xi1>
    %17 = vector.broadcast %16 : vector<1x256xi1> to vector<1x256xi1>
    %18 = arith.xori %14, %17 : vector<1x256xi1>
    %19 = arith.andi %18, %12 : vector<1x256xi1>
    %20 = vector.broadcast %8 : i32 to vector<1x256xi32>
    %21 = arith.addi %10, %20 : vector<1x256xi32>
    %22 = arith.select %19, %21, %10 : vector<1x256xi1>, vector<1x256xi32>
    %c0_8 = arith.constant 0 : index
    %c0_9 = arith.constant 0 : index
    %23 = vector.load %arg7[%c0_8, %c0_9] : memref<4x290xf32, #tpu.memory_space<vmem>>, vector<4x256xf32>
    %c1_i32_10 = arith.constant 1 : i32
    %24 = vector.broadcast %c1_i32_10 : i32 to vector<1x256xi32>
    %25 = arith.cmpi sge, %22, %24 : vector<1x256xi32>
    %cst = arith.constant 0.000000e+00 : f32
    %26 = vector.shape_cast %25 : vector<1x256xi1> to vector<1x256xi1>
    %27 = vector.broadcast %26 : vector<1x256xi1> to vector<4x256xi1>
    %28 = vector.broadcast %cst : f32 to vector<4x256xf32>
    %29 = arith.select %27, %23, %28 : vector<4x256xi1>, vector<4x256xf32>
    %c0_11 = arith.constant 0 : index
    %c1 = arith.constant 1 : index
    %30 = vector.load %arg7[%c0_11, %c1] : memref<4x290xf32, #tpu.memory_space<vmem>>, vector<4x256xf32>
    %c0_12 = arith.constant 0 : index
    %c2 = arith.constant 2 : index
    %31 = vector.load %arg7[%c0_12, %c2] : memref<4x290xf32, #tpu.memory_space<vmem>>, vector<4x256xf32>
    %c14_i32 = arith.constant 14 : i32
    %32 = vector.broadcast %c14_i32 : i32 to vector<1x256xi32>
    %33 = arith.cmpi sle, %22, %32 : vector<1x256xi32>
    %cst_13 = arith.constant 0.000000e+00 : f32
    %34 = vector.shape_cast %33 : vector<1x256xi1> to vector<1x256xi1>
    %35 = vector.broadcast %34 : vector<1x256xi1> to vector<4x256xi1>
    %36 = vector.broadcast %cst_13 : f32 to vector<4x256xf32>
    %37 = arith.select %35, %31, %36 : vector<4x256xi1>, vector<4x256xf32>
    %c0_14 = arith.constant 0 : index
    %c16 = arith.constant 16 : index
    %38 = vector.load %arg7[%c0_14, %c16] : memref<4x290xf32, #tpu.memory_space<vmem>>, vector<4x256xf32>
    %c1_i32_15 = arith.constant 1 : i32
    %39 = vector.broadcast %c1_i32_15 : i32 to vector<1x256xi32>
    %40 = arith.cmpi sge, %22, %39 : vector<1x256xi32>
    %cst_16 = arith.constant 0.000000e+00 : f32
    %41 = vector.shape_cast %40 : vector<1x256xi1> to vector<1x256xi1>
    %42 = vector.broadcast %41 : vector<1x256xi1> to vector<4x256xi1>
    %43 = vector.broadcast %cst_16 : f32 to vector<4x256xf32>
    %44 = arith.select %42, %38, %43 : vector<4x256xi1>, vector<4x256xf32>
    %c0_17 = arith.constant 0 : index
    %c17_18 = arith.constant 17 : index
    %45 = vector.load %arg7[%c0_17, %c17_18] : memref<4x290xf32, #tpu.memory_space<vmem>>, vector<4x256xf32>
    %c0_19 = arith.constant 0 : index
    %c18 = arith.constant 18 : index
    %46 = vector.load %arg7[%c0_19, %c18] : memref<4x290xf32, #tpu.memory_space<vmem>>, vector<4x256xf32>
    %c14_i32_20 = arith.constant 14 : i32
    %47 = vector.broadcast %c14_i32_20 : i32 to vector<1x256xi32>
    %48 = arith.cmpi sle, %22, %47 : vector<1x256xi32>
    %cst_21 = arith.constant 0.000000e+00 : f32
    %49 = vector.shape_cast %48 : vector<1x256xi1> to vector<1x256xi1>
    %50 = vector.broadcast %49 : vector<1x256xi1> to vector<4x256xi1>
    %51 = vector.broadcast %cst_21 : f32 to vector<4x256xf32>
    %52 = arith.select %50, %46, %51 : vector<4x256xi1>, vector<4x256xf32>
    %c0_22 = arith.constant 0 : index
    %c32 = arith.constant 32 : index
    %53 = vector.load %arg7[%c0_22, %c32] : memref<4x290xf32, #tpu.memory_space<vmem>>, vector<4x256xf32>
    %c1_i32_23 = arith.constant 1 : i32
    %54 = vector.broadcast %c1_i32_23 : i32 to vector<1x256xi32>
    %55 = arith.cmpi sge, %22, %54 : vector<1x256xi32>
    %cst_24 = arith.constant 0.000000e+00 : f32
    %56 = vector.shape_cast %55 : vector<1x256xi1> to vector<1x256xi1>
    %57 = vector.broadcast %56 : vector<1x256xi1> to vector<4x256xi1>
    %58 = vector.broadcast %cst_24 : f32 to vector<4x256xf32>
    %59 = arith.select %57, %53, %58 : vector<4x256xi1>, vector<4x256xf32>
    %c0_25 = arith.constant 0 : index
    %c33 = arith.constant 33 : index
    %60 = vector.load %arg7[%c0_25, %c33] : memref<4x290xf32, #tpu.memory_space<vmem>>, vector<4x256xf32>
    %c0_26 = arith.constant 0 : index
    %c34 = arith.constant 34 : index
    %61 = vector.load %arg7[%c0_26, %c34] : memref<4x290xf32, #tpu.memory_space<vmem>>, vector<4x256xf32>
    %c14_i32_27 = arith.constant 14 : i32
    %62 = vector.broadcast %c14_i32_27 : i32 to vector<1x256xi32>
    %63 = arith.cmpi sle, %22, %62 : vector<1x256xi32>
    %cst_28 = arith.constant 0.000000e+00 : f32
    %64 = vector.shape_cast %63 : vector<1x256xi1> to vector<1x256xi1>
    %65 = vector.broadcast %64 : vector<1x256xi1> to vector<4x256xi1>
    %66 = vector.broadcast %cst_28 : f32 to vector<4x256xf32>
    %67 = arith.select %65, %61, %66 : vector<4x256xi1>, vector<4x256xf32>
    %68 = tpu.concatenate %29, %30, %37, %44, %45, %52, %59, %60, %67 in 0 : vector<4x256xf32>, vector<4x256xf32>, vector<4x256xf32>, vector<4x256xf32>, vector<4x256xf32>, vector<4x256xf32>, vector<4x256xf32>, vector<4x256xf32>, vector<4x256xf32> -> vector<36x256xf32>
    %c0_29 = arith.constant 0 : index
    %c0_30 = arith.constant 0 : index
    %69 = vector.load %arg2[%c0_29, %c0_30] : memref<4x36xf32, #tpu.memory_space<vmem>>, vector<4x36xf32>
    %cst_31 = arith.constant dense<0.000000e+00> : vector<4x256xf32>
    %70 = tpu.matmul %69, %68, %cst_31 {dimension_numbers = #tpu.dot_dimension_numbers<[1], [0], [0], [1], [0, 0, 1, 1], [], []>} : vector<4x36xf32>, vector<36x256xf32>, vector<4x256xf32> -> vector<4x256xf32>
    %c0_32 = arith.constant 0 : index
    %c0_33 = arith.constant 0 : index
    %71 = vector.load %arg3[%c0_32, %c0_33] : memref<4x1xf32, #tpu.memory_space<vmem>>, vector<4x1xf32>
    %72 = vector.broadcast %71 : vector<4x1xf32> to vector<4x256xf32>
    %73 = arith.addf %70, %72 : vector<4x256xf32>
    %cst_34 = arith.constant 0.000000e+00 : f32
    %74 = vector.broadcast %cst_34 : f32 to vector<4x256xf32>
    %75 = arith.maximumf %73, %74 : vector<4x256xf32>
    %76 = vector.shape_cast %75 : vector<4x256xf32> to vector<1x4x256xf32>
    %c0_35 = arith.constant 0 : index
    %c0_36 = arith.constant 0 : index
    %c0_37 = arith.constant 0 : index
    %77 = vector.load %arg4[%c0_35, %c0_36, %c0_37] : memref<1x4x256xf32, #tpu.memory_space<vmem>>, vector<1x4x256xf32>
    tpu.vector_store %arg4[%c0_35, %c0_36, %c0_37], %76 {strides = array<i32>} : memref<1x4x256xf32, #tpu.memory_space<vmem>>, vector<1x4x256xf32>,
    %c0_38 = arith.constant 0 : index
    %c0_39 = arith.constant 0 : index
    %78 = vector.load %arg8[%c0_38, %c0_39] : memref<4x1xf32, #tpu.memory_space<vmem>>, vector<4x1xf32>
    %cst_40 = arith.constant dense<0.000000e+00> : vector<4xf32>
    %79 = vector.multi_reduction <add>, %75, %cst_40 [1] : vector<4x256xf32> to vector<4xf32>
    %80 = vector.shape_cast %79 : vector<4xf32> to vector<4x1xf32>
    %81 = arith.addf %78, %80 : vector<4x1xf32>
    %c0_41 = arith.constant 0 : index
    %c0_42 = arith.constant 0 : index
    %82 = vector.load %arg8[%c0_41, %c0_42] : memref<4x1xf32, #tpu.memory_space<vmem>>, vector<4x1xf32>
    tpu.vector_store %arg8[%c0_41, %c0_42], %81 {strides = array<i32>} : memref<4x1xf32, #tpu.memory_space<vmem>>, vector<4x1xf32>,
    %c0_43 = arith.constant 0 : index
    %c0_44 = arith.constant 0 : index
    %83 = vector.load %arg9[%c0_43, %c0_44] : memref<4x1xf32, #tpu.memory_space<vmem>>, vector<4x1xf32>
    %84 = arith.mulf %75, %75 : vector<4x256xf32>
    %cst_45 = arith.constant dense<0.000000e+00> : vector<4xf32>
    %85 = vector.multi_reduction <add>, %84, %cst_45 [1] : vector<4x256xf32> to vector<4xf32>
    %86 = vector.shape_cast %85 : vector<4xf32> to vector<4x1xf32>
    %87 = arith.addf %83, %86 : vector<4x1xf32>
    %c0_46 = arith.constant 0 : index
    %c0_47 = arith.constant 0 : index
    %88 = vector.load %arg9[%c0_46, %c0_47] : memref<4x1xf32, #tpu.memory_space<vmem>>, vector<4x1xf32>
    tpu.vector_store %arg9[%c0_46, %c0_47], %87 {strides = array<i32>} : memref<4x1xf32, #tpu.memory_space<vmem>>, vector<4x1xf32>,
    %c1_i32_48 = arith.constant 1 : i32
    %89 = arith.cmpi eq, %arg0, %c1_i32_48 : i32
    %90 = arith.extui %89 : i1 to i32
    %c0_i32_49 = arith.constant 0 : i32
    %91 = arith.cmpi ne, %90, %c0_i32_49 : i32
    scf.if %91 {
      %c0_50 = arith.constant 0 : index
      %c0_51 = arith.constant 0 : index
      %92 = vector.load %arg8[%c0_50, %c0_51] : memref<4x1xf32, #tpu.memory_space<vmem>>, vector<4x1xf32>
      %c0_52 = arith.constant 0 : index
      %c0_53 = arith.constant 0 : index
      %93 = vector.load %arg5[%c0_52, %c0_53] : memref<4x1xf32, #tpu.memory_space<vmem>>, vector<4x1xf32>
      tpu.vector_store %arg5[%c0_52, %c0_53], %92 {strides = array<i32>} : memref<4x1xf32, #tpu.memory_space<vmem>>, vector<4x1xf32>,
      %c0_54 = arith.constant 0 : index
      %c0_55 = arith.constant 0 : index
      %94 = vector.load %arg9[%c0_54, %c0_55] : memref<4x1xf32, #tpu.memory_space<vmem>>, vector<4x1xf32>
      %c0_56 = arith.constant 0 : index
      %c0_57 = arith.constant 0 : index
      %95 = vector.load %arg6[%c0_56, %c0_57] : memref<4x1xf32, #tpu.memory_space<vmem>>, vector<4x1xf32>
      tpu.vector_store %arg6[%c0_56, %c0_57], %94 {strides = array<i32>} : memref<4x1xf32, #tpu.memory_space<vmem>>, vector<4x1xf32>,
    } else {
    }
    return
  }
  func.func @transform_0(%arg0: i32) -> (i32, i32, i32) {
    %c0_i32 = arith.constant 0 : i32
    %c0_i32_0 = arith.constant 0 : i32
    %c0_i32_1 = arith.constant 0 : i32
    return %arg0, %c0_i32, %c0_i32_0 : i32, i32, i32
  }
  func.func @transform_1(%arg0: i32) -> (i32, i32) {
    %c0_i32 = arith.constant 0 : i32
    %c0_i32_0 = arith.constant 0 : i32
    %c0_i32_1 = arith.constant 0 : i32
    return %c0_i32, %c0_i32_0 : i32, i32
  }
  func.func @transform_2(%arg0: i32) -> (i32, i32) {
    %c0_i32 = arith.constant 0 : i32
    %c0_i32_0 = arith.constant 0 : i32
    %c0_i32_1 = arith.constant 0 : i32
    return %c0_i32, %c0_i32_0 : i32, i32
  }
  func.func @transform_3(%arg0: i32) -> (i32, i32, i32) {
    %c0_i32 = arith.constant 0 : i32
    %c0_i32_0 = arith.constant 0 : i32
    %c0_i32_1 = arith.constant 0 : i32
    return %arg0, %c0_i32, %c0_i32_0 : i32, i32, i32
  }
  func.func @transform_4(%arg0: i32) -> (i32, i32) {
    %c0_i32 = arith.constant 0 : i32
    %c0_i32_0 = arith.constant 0 : i32
    %c0_i32_1 = arith.constant 0 : i32
    return %c0_i32, %c0_i32_0 : i32, i32
  }
  func.func @transform_5(%arg0: i32) -> (i32, i32) {
    %c0_i32 = arith.constant 0 : i32
    %c0_i32_0 = arith.constant 0 : i32
    %c0_i32_1 = arith.constant 0 : i32
    return %c0_i32, %c0_i32_0 : i32, i32
  }
}

</mosaic_0001>

<bundles_post_ra>
// kernel: tpu_custom_call.1
= control target key start
LH: loop header
LB: loop body
LE: loop exit
PB: predicated region body
PF: predicated region fallthrough
CT: control target
= control target key end

     0   :  { %11 = vsyncpa [#allocation6], 0  ;;  %s1183_s0 = inlined_call_operand.hbm [shape: f32[2,4,256], index: 0, kind: input, shape index: {}]   ;;  %s1184_s1 = inlined_call_operand.vmem [shape: f32[4,36], index: 1, kind: input, shape index: {}]   ;;  %s1185_s2 = inlined_call_operand.vmem [shape: f32[4,1], index: 2, kind: input, shape index: {}]   ;;  %s1186_s3 = inlined_call_operand.hbm [shape: f32[2,4,256], index: 3, kind: output, shape index: {0}]   ;;  %s1187_s4 = inlined_call_operand.vmem [shape: f32[4,1], index: 4, kind: output, shape index: {1}]   ;;  %s1188_s5 = inlined_call_operand.vmem [shape: f32[4,1], index: 5, kind: output, shape index: {2}]  }
   0x1   :  { %13 = vsyncpa [#allocation6 + $0x1], 0 }
   0x2   :  { %14 = vsyncpa [#allocation7], 0 }
   0x3   :  { %16 = vsyncpa [#allocation7 + $0x1], 0  ;;  %s916_s18 = smov 0   ;;  %s918_s19 = smov 0  }
   0x4   :  { %s920_s20 = smov 0   ;;  %s922_s21 = smov 0  }
   0x5 LB: > { %s937_s22 = sadd.s32 4294967295, %s870_s21   ;;  %s648_s23 = sadd.s32 4294967294, %s870_s21   ;;  %s870_s21 = sphi %s922_s21, %s1211_s21   ;;  %s866_s20 = sphi %s920_s20, %s1210_s20   ;;  %s862_s19 = sphi %s918_s19, %s1209_s19   ;;  %s858_s18 = sphi %s916_s18, %s1208_s18  }
   0x6   : > { %s941_s24 = sadd.s32 1, %s870_s21   ;;  %s29_s25 = sadd.s32 1, %s866_s20 }
   0x7   : > { %s26_s26 = ssub.s32 %s870_s21, %s941_s24  ;;  %p36_p0 = scmp.ne.s32.totalorder %s866_s20, %s862_s19 }
   0x8   : > { %p27_p1 = scmp.eq.s32.totalorder %s26_s26, 0  ;;  %p37_p2 = scmp.eq.s32.totalorder %s870_s21, 0 }
   0x9   : > { %p42_p3 = scmp.ne.s32.totalorder %s862_s19, %s858_s18  ;;  %p43_p4 = scmp.eq.s32.totalorder %s937_s22, 0 }
   0xa   : > { %s953_s27 = scalar_select %p27_p1, %s866_s20, %s29_s25  }
   0xb   : > { %p955_p5 = por %p37_p2, %p36_p0  ;;  %p959_p6 = por %p43_p4, %p42_p3 }
   0xc   : > { %p108_p7 = scmp.eq.s32.totalorder %s937_s22, 1  ;;  %p114_p8 = scmp.eq.s32.totalorder %s648_s23, 1 }
   0xd   : > { %p689_p10 = scmp.lt.s32.totalorder %s870_s21, 2  ;;  %s182_s7 = sand.u32 1, %s866_s20  }
   0xe   : > { %p966_p11 = por %p108_p7, %p36_p0  ;;  %p970_p12 = por %p114_p8, %p42_p3 }
   0xf   : > { %s667_s8 = sshll.u32 %s870_s21, 7  ;;  %s651_s9 = sshll.u32 %s182_s7, 3 }
  0x10   : > { %s1192_s30 = scalar_select %p966_p11, 1, 0 }
  0x11   : > { %s1193_s6 = scalar_select %p970_p12, 1, 0 }
  0x12   : > { %s979_s12 = scalar_lea.hbm %s1183_s0, %s667_s8  ;;  %s186_s13 = scalar_lea.vmem [#allocation5], %s651_s9 }
  0x13   : > { %s194_s14 = sshll.u32 %s186_s13, 4  ;;  %p983_p13 = pnand %p689_p10, %p955_p5  ;;  %s987_s14 = int_to_ptr.vmem [resolvable:$true] %s194_s14 }
  0x14   : > { %s183_s16 = scalar_lea.sflag [#allocation6], %s182_s7  ;;  %s774_s17 = scalar_lea.hbm %s979_s12, 128 }
  0x15   : > { %p775_p2 = scmp.ne.s32.totalorder %s979_s12, %s774_s17  ;;  %p776_p3 = pneg %p983_p13 }
  0x16   : > { %s779_s26 = scalar_lea.hbm %s1183_s0, 256  ;;  %p780_p5 = scmp.lt.u32.totalorder %s979_s12, %s1183_s0 }
  0x17   : > { %p777_p4 = pnand %p776_p3, %p775_p2  ;;  %p781_p8 = scmp.lt.u32.totalorder %s779_s26, %s774_s17 }
  0x18   : > { %p783_p9 = scmp.lt.u32.totalorder %s774_s17, %s979_s12 }
  0x19   : > { %p778_p7 = pneg %p777_p4  ;;  %p782_p10 = por %p781_p8, %p780_p5 }
  0x1b   : > { %p784_p0 = por %p783_p9, %p782_p10 }
  0x1d   : > { %p785_p1 = pnand %p784_p0, %p778_p7 }
  0x1f   : > { %788 = shalt.err (!%p785_p1)
}
  0x20   : > { %s789_s7 = scalar_lea.vmem %s987_s14, 128  ;;  %s872_s9 = smov [#allocation5]  }
  0x21   : > { %p790_p2 = scmp.ne.s32.totalorder %s987_s14, %s789_s7  ;;  %s794_s10 = sshll.u32 %s872_s9, 4  ;;  %s795_s10 = int_to_ptr.vmem [resolvable:$false] %s794_s10 }
  0x22   : > { %s796_s11 = scalar_lea.vmem %s795_s10, 256  ;;  %p797_p11 = scmp.lt.s32.totalorder %s987_s14, %s795_s10 }
  0x23   : > { %p792_p4 = pnand %p790_p2, %p776_p3  ;;  %p798_p5 = scmp.lt.s32.totalorder %s796_s11, %s789_s7 }
  0x25   : > { %p793_p12 = pneg %p792_p4  ;;  %p799_p8 = por %p798_p5, %p797_p11 }
  0x27   : > { %p800_p9 = pnand %p799_p8, %p793_p12 }
  0x29   : > { %803 = shalt.err (!%p800_p9)
}
  0x2a   : > { %684 = dma.hbm_to_vmem [thread:$0]  (!%p983_p13), %s979_s12, 128, %s987_s14, %s183_s16  }
  0x2b   : > { %p1195_p0 = scmp.lt.s32.totalorder %s870_s21, 3  ;;  %p1196_p1 = scmp.ge.s32.totalorder %s870_s21, 1 }
  0x2d   : > { %p200_p3 = pnand %p1196_p1, %p1195_p0 }
  0x2e   : > { %s1021_s13 = sand.u32 (!%p200_p3), 1, %s862_s19  }
  0x2f   : > { %203 = sbr.rel (%p200_p3) target bundleno = 743 (0x2e7), region = 32  ;;  %s655_s17 = sshll.u32 (!%p200_p3), %s1021_s13, 3 }
  0x30   : > { %s206_s23 = scalar_lea.sflag (!%p200_p3), [#allocation6], %s1021_s13  ;;  %s209_s25 = scalar_lea.vmem (!%p200_p3), [#allocation5], %s655_s17 }
  0x36   : > { %849 = dma.done.wait (%p959_p6), %s206_s23, 128  }
  0x37   : > { %851 = vsyncadd (%p959_p6), %s206_s23, 4294967168  ;;  %s1029_s15 = scalar_lea.vmem [#allocation8], %s655_s17  ;;  %p657_p11 = scmp.ne.s32.totalorder %s937_s22, 0 }
  0x38   : > { %vm241_vm0 = vcmask (!%p657_p11), 273408   ;;  %vm243_vm1 = vcmask (!%p657_p11), 3072   ;;  %v873_v0 = vmov (!%p657_p11), 0.0  }
  0x39   : > { %239 = sbr.rel (%p657_p11) target bundleno = 64 (0x40), region = 40  ;;  %240 = vst [vmem:[#allocation2] sm:$0xff] (!%p657_p11), %v873_v0  ;;  %242 = vst.msk [vmem:[#allocation2 + $0x8] sm:$0xf] (!%p657_p11), %vm241_vm0, %v873_v0 }
  0x3a   : > { %244 = vst.msk [vmem:[#allocation3] sm:$0xf] (!%p657_p11), %vm243_vm1, %v873_v0  ;;  %245 = vst.msk [vmem:[#allocation4] sm:$0xf] (!%p657_p11), %vm243_vm1, %v873_v0 }
  0x40 PF: > { %v246_v1 = vld [vmem:[%s209_s25] sm:$0xff]  ;;  %s874_s12 = smov 17   ;;  %vm255_vm2 = vcmask 1043592   ;;  %vm256_vm3 = vcmask 1047556   ;;  %vm251_vm4 = vcmask 138240   ;;  %vm259_vm5 = vcmask 134144  }
  0x41   : > { %248 = vrot.lane.b32.xlu0 %v246_v1, %s874_s12  ;;  %vm257_vm6 = vmor %vm256_vm3, %vm255_vm2  ;;  %s875_s29 = smov 126   ;;  %s876_s14 = smov 112   ;;  %v882_v12 = vmov 0.0   ;;  %v883_v13 = vmov 0   ;;  %v430_v14 = vld [vmem:[%s1185_s2] sm:$0xf]  ;;  %v261_v15 = vlaneseq }
  0x42   : > { %s877_s16 = smov 110   ;;  %s878_s26 = smov 111   ;;  %510 = vmatprep.mubr.f32.mxu0 %v882_v12  ;;  %770 = vset.pattern.permute.xlu0 %v883_v13  ;;  %vm381_vm8 = vcmask 1039360   ;;  %vm420_vm10 = vcmask 1043456   ;;  %vm415_vm11 = vcmask 777216   ;;  %vm314_vm12 = vcmask 1031168  }
  0x43   : > { %s879_s28 = smov 96   ;;  %s880_s8 = smov 127   ;;  %v262_v18 = vand.u32 127, %v261_v15  ;;  %vm327_vm13 = vcmask 916480   ;;  %vm353_vm15 = vcmask 785408   ;;  %vm340_vm1 = vcmask 900096  }
  0x44   : > { %s881_s7 = smov 95   ;;  %s884_s9 = smov 94   ;;  %vm398_vm2 = vcmask 908288   ;;  %vm366_vm3 = vcmask 769024  }
  0x45   : > { %v263_v21 = vadd.s32 128, %v262_v18  ;;  %v268_v22 = vand.u32 15, %v262_v18  ;;  %p661_p6 = scmp.ne.s32.totalorder %s937_s22, 1 }
  0x47   : > { %v275_v25 = vand.u32 15, %v263_v21  ;;  %vm1054_vm7 = vcmp.ge.s32.totalorder %v268_v22, 1  ;;  %vm1075_vm0 = vcmp.le.s32.totalorder %v268_v22, 14 }
  0x49   : > { %vm1060_vm9 = vcmp.ge.s32.totalorder %v275_v25, 1  ;;  %vm1070_vm14 = vcmp.le.s32.totalorder %v275_v25, 14 }
  0xb3   : > { %v249_v2 = vpop.permute.xlu0 %248 }
  0xb4   : > { %v250_v3 = vrot.slane %v249_v2, 4 }
  0xb6   : > { %v252_v4 = vsel %vm251_vm4, %v250_v3, %v249_v2  ;;  %260 = vst.msk [vmem:[#allocation2 + $0x8] sm:$0xf] %vm259_vm5, %v250_v3  ;;  %vm436_vm4 = vcmask 293888   ;;  %vm531_vm5 = vcmask 3072  }
  0xb7   : > { %258 = vst.msk [vmem:[#allocation2] sm:$0xff] %vm257_vm6, %v252_v4 }
  0xbd   : > { %v300_v6 = vld [vmem:[#allocation2 + $0x8] sm:$0xf] }
  0xbe   : > { %v1032_v5 = vld [vmem:[#allocation2] sm:$0xff]  ;;  %v374_v7 = vcombine.low %v300_v6, %v300_v6 }
  0xbf   : > { %308 = vrot.lane.b32.xlu0 %v1032_v5, %s875_s29  ;;  %321 = vrot.lane.b32.xlu1 %v1032_v5, %s876_s14  ;;  %v1041_v9 = vcombine.high %v1032_v5, %v1032_v5  ;;  %v373_v11 = vcombine.low %v1032_v5, %v1032_v5  ;;  %v298_v32 = vsel %vm1054_vm7, %v1032_v5, 0.0 }
  0xc0   : > { %v735_v8 = vpack.i.bf16 %v374_v7, %v1032_v5 }
  0xc1   : > { %v750_v10 = vpack.i.bf16 %v300_v6, %v1041_v9  ;;  %v299_v37 = vsel %vm1060_vm9, %v1041_v9, 0.0 }
  0xc3   : > { %334 = vrot.lane.b32.xlu0 %v1032_v5, %s877_s16  ;;  %392 = vrot.lane.b32.xlu1 %v1032_v5, %s878_s26 }
  0xc7   : > { %347 = vrot.lane.b32.xlu0 %v1032_v5, %s879_s28  ;;  %736 = vrot.lane.b32.xlu1 %v735_v8, %s880_s8 }
  0xcb   : > { %741 = vrot.lane.b32.xlu0 %v735_v8, %s881_s7  ;;  %751 = vrot.lane.b32.xlu1 %v750_v10, %s875_s29 }
  0xcf   : > { %375 = vrot.lane.b32.xlu1 %v373_v11, %s880_s8  ;;  %746 = vrot.lane.b32.xlu0 %v750_v10, %s876_s14 }
  0xd3   : > { %761 = vrot.lane.b32.xlu1 %v750_v10, %s879_s28  ;;  %756 = vrot.lane.b32.xlu0 %v750_v10, %s877_s16 }
  0xd7   : > { %766 = vrot.lane.b32.xlu1 %v750_v10, %s878_s26  ;;  %409 = vrot.lane.b32.xlu0 %v373_v11, %s881_s7 }
  0xdb   : > { %362 = vrot.lane.b32.xlu1 %v1041_v9, %s884_s9  ;;  %364 = vrot.lane.b32.xlu0 %v300_v6, %s884_s9 }
  0xdf   : > { %360 = vrot.lane.b32.xlu1 %v1032_v5, %s884_s9  ;;  %433 = vperm.xlu0 %770, %v430_v14  }
 0x131   : > { %v309_v16 = vpop.permute.xlu0 %308  ;;  %v322_v17 = vpop.permute.xlu1 %321 }
 0x135   : > { %v335_v19 = vpop.permute.xlu0 %334  ;;  %v1052_v20 = vpop.permute.xlu1 %392 }
 0x139   : > { %v348_v23 = vpop.permute.xlu0 %347  ;;  %v737_v24 = vpop.permute.xlu1 %736 }
 0x13a   : > { %v739_v27 = vunpack.i.h.bf16 %v737_v24  ;;  %v738_v28 = vunpack.i.l.bf16 %v737_v24 }
 0x13c   : > { %v383_v39 = vsel %vm381_vm8, %v738_v28, %v739_v27 }
 0x13d   : > { %v1058_v29 = vpop.permute.xlu0 %741  ;;  %v752_v30 = vpop.permute.xlu1 %751  ;;  %v422_v48 = vsel %vm420_vm10, %v299_v37, %v383_v39 }
 0x13e   : > { %v754_v33 = vunpack.i.h.bf16 %v752_v30  ;;  %v753_v34 = vunpack.i.l.bf16 %v752_v30  ;;  %v744_v43 = vunpack.i.h.bf16 %v1058_v29  ;;  %v743_v44 = vunpack.i.l.bf16 %v1058_v29 }
 0x140   : > { %v316_v47 = vsel %vm314_vm12, %v753_v34, %v754_v33  ;;  %v315_v53 = vsel %vm314_vm12, %v309_v16, %v753_v34  ;;  %v417_v59 = vsel %vm415_vm11, %v743_v44, %v744_v43 }
 0x141   : > { %v376_v35 = vpop.permute.xlu1 %375  ;;  %v747_v36 = vpop.permute.xlu0 %746  ;;  %v320_v60 = vsel %vm1070_vm14, %v316_v47, 0.0  ;;  %v319_v7 = vsel %vm1075_vm0, %v315_v53, 0.0 }
 0x142   : > { %v749_v40 = vunpack.i.h.bf16 %v747_v36  ;;  %v748_v41 = vunpack.i.l.bf16 %v747_v36  ;;  %v382_v49 = vsel %vm381_vm8, %v376_v35, %v738_v28  ;;  %v429_v35 = vld [vmem:[%s1184_s1] sm:$0xf] }
 0x143   : > { %v421_v8 = vsel %vm420_vm10, %v298_v32, %v382_v49 }
 0x144   : > { %v328_v45 = vsel %vm327_vm13, %v322_v17, %v748_v41  ;;  %v329_v46 = vsel %vm327_vm13, %v748_v41, %v749_v40 }
 0x145   : > { %v762_v50 = vpop.permute.xlu1 %761  ;;  %v757_v51 = vpop.permute.xlu0 %756  ;;  %v333_v52 = vsel %vm1060_vm9, %v329_v46, 0.0  ;;  %v332_v54 = vsel %vm1054_vm7, %v328_v45, 0.0 }
 0x146   : > { %v764_v55 = vunpack.i.h.bf16 %v762_v50  ;;  %v763_v56 = vunpack.i.l.bf16 %v762_v50  ;;  %v759_v57 = vunpack.i.h.bf16 %v757_v51  ;;  %v758_v58 = vunpack.i.l.bf16 %v757_v51 }
 0x147   : > { %v389_v61 = vrot.slane %v333_v52, 4  ;;  %v388_v62 = vrot.slane %v332_v54, 4  ;;  %v524_v52 = vld [vmem:[#allocation3] sm:$0xf]  ;;  %v533_v54 = vld [vmem:[#allocation4] sm:$0xf] }
 0x148   : > { %v354_v63 = vsel %vm353_vm15, %v348_v23, %v763_v56  ;;  %v355_v0 = vsel %vm353_vm15, %v763_v56, %v764_v55  ;;  %v341_v1 = vsel %vm340_vm1, %v335_v19, %v758_v58  ;;  %v342_v2 = vsel %vm340_vm1, %v758_v58, %v759_v57 }
 0x149   : > { %v767_v3 = vpop.permute.xlu1 %766  ;;  %v410_v4 = vpop.permute.xlu0 %409  ;;  %v346_v5 = vsel %vm1070_vm14, %v342_v2, 0.0  ;;  %v424_v6 = vsel %vm420_vm10, %v320_v60, %v389_v61  ;;  %v345_v12 = vsel %vm1075_vm0, %v341_v1, 0.0  ;;  %v358_v13 = vsel %vm1054_vm7, %v354_v63, 0.0 }
 0x14a   : > { %v769_v9 = vunpack.i.h.bf16 %v767_v3  ;;  %v768_v10 = vunpack.i.l.bf16 %v767_v3  ;;  %v406_v11 = vrot.slane %v346_v5, 4  ;;  %v669_v14 = vpack.c.bf16 %v424_v6, %v422_v48 }
 0x14b   : > { %v423_v15 = vsel %vm420_vm10, %v319_v7, %v388_v62  ;;  %v359_v16 = vsel %vm1060_vm9, %v355_v0, 0.0  ;;  %v416_v19 = vsel %vm415_vm11, %v410_v4, %v743_v44  ;;  %v405_v26 = vrot.slane %v345_v12, 4 }
 0x14c   : > { %v399_v17 = vsel %vm398_vm2, %v1052_v20, %v768_v10  ;;  %v400_v18 = vsel %vm398_vm2, %v768_v10, %v769_v9  ;;  %v671_v21 = vpack.c.bf16 %v423_v15, %v421_v8  ;;  %670 = vmatprep.subr.bf16.mxu0 %v669_v14  ;;  %v428_v25 = vsel %vm420_vm10, %v359_v16, %v417_v59 }
 0x14d   : > { %v363_v22 = vpop.permute.xlu1 %362  ;;  %v365_v23 = vpop.permute.xlu0 %364  ;;  %v426_v24 = vsel %vm420_vm10, %v400_v18, %v406_v11  ;;  %v427_v28 = vsel %vm420_vm10, %v358_v13, %v416_v19  ;;  %v425_v20 = vsel %vm420_vm10, %v399_v17, %v405_v26 }
 0x14e   : > { %672 = vmatpush1.bf16.msra.mxu0 %v671_v21  ;;  %v673_v27 = vpack.c.bf16 %v428_v25, %v426_v24  ;;  %v368_v29 = vsel %vm366_vm3, %v363_v22, %v365_v23  ;;  %v675_v30 = vpack.c.bf16 %v427_v28, %v425_v20 }
 0x14f   : > { %v372_v32 = vsel %vm1070_vm14, %v368_v29, 0.0 }
 0x150   : > { %674 = vmatprep.subr.bf16.mxu0 %v673_v27 }
 0x151   : > { %v361_v31 = vpop.permute.xlu1 %360 }
 0x152   : > { %v367_v33 = vsel %vm366_vm3, %v361_v31, %v363_v22  ;;  %676 = vmatpush1.bf16.msra.mxu0 %v675_v30 }
 0x153   : > { %v371_v34 = vsel %vm1075_vm0, %v367_v33, 0.0  ;;  %658 = vmatprep.subr.msk.mxu0 %vm420_vm10, %v372_v32 }
 0x156   : > { %659 = vmatpush1.msk.msra.mxu0 %vm420_vm10, %v371_v34 }
 0x157   : > { %660 = vmatmul.mubr.msk.f32.vlgmr.msra.gmra.mrb[0].mxu0 %vm436_vm4, %v429_v35 }
 0x15e   : > { %v434_v36 = vpop.permute.xlu0 %433 }
 0x22a   : > { %v512_v37 = vpop.f32.mrb[0].mxu0 }
 0x22b   : > { %v513_v38 = vadd.f32 %v512_v37, %v434_v36  ;;  %v514_v39 = vpop.f32.mrb[1].mxu0 }
 0x22c   : > { %v515_v40 = vadd.f32 %v514_v39, %v434_v36 }
 0x22d   : > { %v517_v41 = vmax.f32 %v513_v38, 0.0 }
 0x22e   : > { %v518_v43 = vmax.f32 %v515_v40, 0.0 }
 0x22f   : > { %v525_v42 = vsel %vm420_vm10, %v517_v41, 0.0  ;;  %v534_v44 = vmul.f32 %v517_v41, %v517_v41 }
 0x230   : > { %v521_v45 = vcombine.low %v517_v41, %v518_v43  ;;  %v526_v46 = vsel %vm420_vm10, %v518_v43, 0.0  ;;  %v535_v47 = vmul.f32 %v518_v43, %v518_v43 }
 0x231   : > { %v527_v48 = vadd.f32 %v526_v46, %v525_v42  ;;  %v536_v49 = vsel %vm420_vm10, %v534_v44, 0.0 }
 0x232   : > { %523 = vst [vmem:[%s1029_s15] sm:$0xff] %v521_v45  ;;  %v537_v50 = vsel %vm420_vm10, %v535_v47, 0.0 }
 0x233   : > { %528 = vadd.xlane.f32.xlu1 %v527_v48  ;;  %v538_v51 = vadd.f32 %v537_v50, %v536_v49 }
 0x235   : > { %539 = vadd.xlane.f32.xlu0 %v538_v51 }
 0x2bf   : > { %546 = sbr.rel (%p661_p6) target bundleno = 718 (0x2ce), region = 44 }
 0x2c0   : > { %v529_v53 = vpop.xlane.xlu1 %528 }
 0x2c1   : > { %v530_v55 = vadd.f32 %v529_v53, %v524_v52 }
 0x2c2   : > { %v540_v56 = vpop.xlane.xlu0 %539 }
 0x2c3   : > { %532 = vst.msk [vmem:[#allocation3] sm:$0xf] %vm531_vm5, %v530_v55  ;;  %v541_v57 = vadd.f32 %v540_v56, %v533_v54 }
 0x2c5   : > { %542 = vst.msk [vmem:[#allocation4] sm:$0xf] %vm531_vm5, %v541_v57 }
 0x2ca   : > { %v547_v58 = vld [vmem:[#allocation3] sm:$0xf] }
 0x2cb   : > { %548 = vst.msk [vmem:[%s1187_s4] sm:$0xf] %vm531_vm5, %v547_v58 }
 0x2cc   : > { %v549_v59 = vld [vmem:[#allocation4] sm:$0xf] }
 0x2cd   : > { %550 = vst.msk [vmem:[%s1188_s5] sm:$0xf] %vm531_vm5, %v549_v59 }
 0x2ce PF: > { %s668_s16 = sshll.u32 %s937_s22, 7  ;;  %s566_s7 = sshll.u32 %s1029_s15, 4  ;;  %s567_s7 = int_to_ptr.vmem [resolvable:$true] %s566_s7 }
 0x2cf   : > { %s1144_s8 = scalar_lea.hbm %s1186_s3, %s668_s16  ;;  %s552_s9 = scalar_lea.sflag [#allocation7], %s1021_s13 }
 0x2d0   : > { %s804_s10 = scalar_lea.vmem %s567_s7, 128  ;;  %p1205_p13 = scmp.ne.s32.totalorder %s1192_s30, 0 }
 0x2d1   : > { %p805_p12 = scmp.ne.s32.totalorder %s567_s7, %s804_s10  ;;  %s885_s11 = smov [#allocation8]  }
 0x2d2   : > { %s808_s17 = sshll.u32 %s885_s11, 4  ;;  %s809_s17 = int_to_ptr.vmem [resolvable:$false] %s808_s17 }
 0x2d3   : > { %p806_p7 = pnand %p805_p12, %p1205_p13  ;;  %s810_s23 = scalar_lea.vmem %s809_s17, 256 }
 0x2d4   : > { %p811_p2 = scmp.lt.s32.totalorder %s567_s7, %s809_s17  ;;  %p812_p4 = scmp.lt.s32.totalorder %s810_s23, %s804_s10 }
 0x2d5   : > { %p807_p10 = pneg %p806_p7 }
 0x2d6   : > { %p813_p5 = por %p812_p4, %p811_p2 }
 0x2d8   : > { %p814_p8 = pnand %p813_p5, %p807_p10 }
 0x2da   : > { %817 = shalt.err (!%p814_p8)
}
 0x2db   : > { %s818_s22 = scalar_lea.hbm %s1144_s8, 128  ;;  %s822_s25 = scalar_lea.hbm %s1186_s3, 256 }
 0x2dc   : > { %p819_p9 = scmp.ne.s32.totalorder %s1144_s8, %s818_s22  ;;  %p823_p3 = scmp.lt.u32.totalorder %s1144_s8, %s1186_s3 }
 0x2dd   : > { %p824_p11 = scmp.lt.u32.totalorder %s822_s25, %s818_s22  ;;  %p826_p12 = scmp.lt.u32.totalorder %s818_s22, %s1144_s8 }
 0x2de   : > { %p820_p0 = pnand %p819_p9, %p1205_p13 }
 0x2df   : > { %p825_p6 = por %p824_p11, %p823_p3 }
 0x2e0   : > { %p821_p1 = pneg %p820_p0 }
 0x2e1   : > { %p827_p7 = por %p826_p12, %p825_p6 }
 0x2e3   : > { %p828_p10 = pnand %p827_p7, %p821_p1 }
 0x2e5   : > { %831 = shalt.err (!%p828_p10)
}
 0x2e6   : > { %679 = dma.vmem_to_hbm [thread:$0]  (%p1205_p13), %s567_s7, 128, %s1144_s8, %s552_s9  }
 0x2e7 PF: > { %s590_s14 = sand.u32 1, %s858_s18   ;;  %p1206_p2 = scmp.ne.s32.totalorder %s1193_s6, 0 }
 0x2e8   : > { %p1207_p4 = scmp.ge.s32.totalorder %s870_s21, 2  ;;  %s591_s16 = scalar_lea.sflag [#allocation7], %s590_s14 }
 0x2ea   : > { %p686_p5 = pnand %p1207_p4, %p1206_p2 }
 0x2ec   : > { %853 = dma.done.wait (!%p686_p5), %s591_s16, 128  }
 0x2ed   : > { %855 = vsyncadd (!%p686_p5), %s591_s16, 4294967168  ;;  %p19_p8 = scmp.ge.s32.totalorder %s941_s24, 4   ;;  %s1208_s18 = smov %s862_s19 }
 0x2ee   : > { %s1209_s19 = smov %s866_s20  ;;  %s1210_s20 = smov %s953_s27 }
 0x2ef   : > { %s1211_s21 = smov %s941_s24  ;;  %21 = sbr.rel (!%p19_p8) target bundleno = 5 (0x5), region = 101 }
 0x2f6   :  { %596 = vsyncpa [#allocation6], 1 }
 0x2f7   :  { %598 = vsyncpa [#allocation6 + $0x1], 1 }
 0x2f8   :  { %599 = vsyncpa [#allocation7], 1 }
 0x2f9   :  { %601 = vsyncpa [#allocation7 + $0x1], 1 }

</bundles_post_ra>
